<compile_context>
chip_gen: v7x
topology: tpu7x:2x2x1
jax: 0.10.0
libtpu: 0.0.40
codegen_flags: <defaults>
</compile_context>

<pallas_src>
import jax
import jax.numpy as jnp
from jax.experimental import pallas as pl
from jax.experimental.pallas import tpu as pltpu


def _gat_kernel(featT_ref, attT_ref, wfT_ref, outT_ref):
    # hT[f, (b,j)] = sum_k wf[k,f] * feat[b,j,k]          (fc_features, bias hoisted)
    hT = jnp.dot(wfT_ref[...], featT_ref[...], preferred_element_type=jnp.float32)
    # outT[f, (b,i)] = sum_j hT[f, (b,j)] * att[b,i,j]    (one 128-deep MXU pass over
    # the block-diagonal, row-stochastic attention; zeros off the diagonal blocks)
    outT_ref[...] = jnp.dot(hT, attT_ref[...], preferred_element_type=jnp.float32)


def _num_tensorcores():
    """v7x has 2 TensorCores per chip; v5e/v6e have 1. Grid steps match this."""
    try:
        kind = jax.devices()[0].device_kind.lower()
    except Exception:
        return 1
    return 2 if ("v7" in kind or "7x" in kind) else 1


def _pick_batch_block(B, N, target_steps=1):
    """Batch block BB: blocks must be 128-lane aligned (BB*N % 128 == 0) or cover
    the full array (BB == B).  Prefer exactly `target_steps` grid steps (== number
    of TensorCores), otherwise the fewest steps."""
    candidates = [bb for bb in range(1, B + 1)
                  if B % bb == 0 and ((bb * N) % 128 == 0 or bb == B)]
    # Scaling guard: the (BB*N, BB*N) attention block must stay well inside VMEM
    # (adj grows as N^2 -- relevant on v7x's 64 MiB budget if shapes ever grow).
    fitting = [bb for bb in candidates if (bb * N) * (bb * N) * 4 <= (8 << 20)]
    candidates = fitting or candidates[:1]
    # TODO(synk): if N grows so large that even BB=1 overflows VMEM, tile the
    # neighbour (j) axis as a trailing "arbitrary" grid dim with a pl.when-
    # initialized accumulator instead of a single block per batch.

    def score(bb):
        steps = B // bb
        return (steps != target_steps, steps)

    return min(candidates, key=score)


def _block_diag_attention_T(adj, BB):
    """Transposed, block-diagonal, degree-normalized attention.

    Returns A of shape (G*BB*N, BB*N) with, inside grid block g,
      A[c*N + j, b*N + i] = att[g*BB + b, i, j] * (b == c),
    where att = (adj > 0) / deg (uniform 1/N for isolated rows) is exactly the
    softmax of this module's row-constant scores.  Rows of att sum to 1, which
    is what makes the bias hoist in the wrapper exact.
    """
    B, N, _ = adj.shape
    G = B // BB
    mask = (adj > 0).astype(jnp.float32)
    deg = jnp.sum(mask, axis=-1, keepdims=True)
    empty = deg == 0.0
    mask = jnp.where(empty, 1.0, mask)
    deg = jnp.where(empty, jnp.float32(N), deg)
    att = mask / deg                                     # (B, N, N), row-stochastic
    attT = jnp.swapaxes(att, 1, 2)                       # attT[b, j, i] = att[b, i, j]
    attT = attT.reshape(G, BB, N, N)                     # [g, b, j, i]
    eye = jnp.eye(BB, dtype=jnp.float32)
    bd = jnp.einsum("gbji,cb->gcjbi", attT, eye)         # [g, c, j, b, i]
    return bd.reshape(G * BB * N, BB * N)


def graph_attention_forward(features, adj, multimodal_features, params):
    """features: (B,N,1,Fin), adj: (B,N,N), multimodal_features: (B,768,H,W)."""
    B, N, _, Fin = features.shape
    Fout = params["wf"].shape[1]

    # Hoisted multimodal branch: adaptive_avg_pool2d((1,1)) == spatial mean,
    # then fc_multimodal; fc_features.bias folded into the same per-batch bias.
    # Added to the kernel OUTPUT (valid because attention rows sum to 1).
    pooled = jnp.mean(multimodal_features, axis=(2, 3))            # (B, 768)
    bias = pooled @ params["wm"] + params["bm"] + params["bf"]     # (B, Fout)
    bias = bias.astype(jnp.float32)

    target_steps = _num_tensorcores()
    BB = _pick_batch_block(B, N, target_steps)
    G = B // BB

    # Lane-dense, transposed operands (batch*node on the 128-lane axis).
    featT = features.reshape(B * N, Fin).astype(jnp.float32).T     # (Fin, B*N)
    wfT = params["wf"].T.astype(jnp.float32)                       # (Fout, Fin) == torch layout
    attT_bd = _block_diag_attention_T(adj, BB)                     # (G*BB*N, BB*N)

    outT = pl.pallas_call(
        _gat_kernel,
        out_shape=jax.ShapeDtypeStruct((Fout, B * N), jnp.float32),
        grid=(G,),
        in_specs=[
            pl.BlockSpec((Fin, BB * N), lambda g: (0, g)),        # featT slab
            pl.BlockSpec((BB * N, BB * N), lambda g: (g, 0)),     # block-diag attention
            pl.BlockSpec((Fout, Fin), lambda g: (0, 0)),          # weights, resident
        ],
        out_specs=pl.BlockSpec((Fout, BB * N), lambda g: (0, g)),  # lane-dense output slab
        compiler_params=pltpu.CompilerParams(
            dimension_semantics=("parallel",)),
    )(featT, attT_bd, wfT)

    # outT[f, b*N + i] -> (B, N, Fout), then add the hoisted per-batch bias.
    return outT.reshape(Fout, B, N).transpose(1, 2, 0) + bias[:, None, :]


def _reference_forward(features, adj, multimodal_features, params):
    """Pure-JAX mirror of the literal PyTorch forward, for verification."""
    B, N, _, Fin = features.shape
    feat = features.reshape(B, N, Fin)
    pooled = jnp.mean(multimodal_features, axis=(2, 3))                   # (B, 768)
    h_mm = (pooled @ params["wm"] + params["bm"]).reshape(B, 1, -1)       # (B, 1, Fout)
    h_feat = feat @ params["wf"] + params["bf"]                           # (B, N, Fout)
    h_input = h_feat + h_mm
    a_in = jnp.concatenate(
        [jnp.repeat(h_input[:, :, None, :], N, axis=2),
         jnp.repeat(h_input[:, None, :, :], N, axis=1)], axis=-1)
    a_in = a_in.sum(axis=2)                                               # (B, N, 2*Fout)
    wa = jnp.concatenate([params["wa1"], params["wa2"]], axis=-1)         # (1, 2*Fout)
    e = a_in @ wa[0] + params["ba"][0, 0]                                 # (B, N)
    e = jnp.where(e > 0, e, 0.01 * e)[..., None]                          # leaky_relu
    attention = jnp.where(adj > 0, e, -9e15)
    attention = jax.nn.softmax(attention, axis=-1)
    return jnp.einsum("bij,bjd->bid", attention, h_input)


def _init_params(key, fin, fout):
    """Deterministic PyTorch-Linear-style init; weights stored pre-transposed."""
    ks = jax.random.split(key, 7)

    def u(k, shape, fan_in):
        bound = 1.0 / jnp.sqrt(fan_in)
        return jax.random.uniform(k, shape, jnp.float32, -bound, bound)

    return {
        "wf": u(ks[0], (fin, fout), fin),            # fc_features.weight^T
        "bf": u(ks[1], (1, fout), fin),              # fc_features.bias
        "wm": u(ks[2], (768, fout), 768),            # fc_multimodal.weight^T
        "bm": u(ks[3], (1, fout), 768),              # fc_multimodal.bias
        "wa1": u(ks[4], (1, fout), 2 * fout),        # attn.weight[:, :fout] (ref only)
        "wa2": u(ks[5], (1, fout), 2 * fout),        # attn.weight[:, fout:] (ref only)
        "ba": u(ks[6], (1, 1), 2 * fout),            # attn.bias             (ref only)
    }


if __name__ == "__main__":
    B, N, Fin, Fout, H, W = 32, 8, 16, 32, 4, 4
    key = jax.random.PRNGKey(0)
    k_feat, k_adj, k_mm, k_par = jax.random.split(key, 4)

    features = jax.random.normal(k_feat, (B, N, 1, Fin), jnp.float32)
    adj = (jax.random.uniform(k_adj, (B, N, N)) > 0.5).astype(jnp.float32)
    adj = jnp.maximum(adj, jnp.eye(N, dtype=jnp.float32)[None])   # self-loops
    multimodal = jax.random.normal(k_mm, (B, 768, H, W), jnp.float32)
    params = _init_params(k_par, Fin, Fout)

    out = graph_attention_forward(features, adj, multimodal, params)
    out = jax.block_until_ready(out)

    ref = _reference_forward(features, adj, multimodal, params)
    assert out.shape == (B, N, Fout)
    assert jnp.allclose(out, ref, rtol=1e-4, atol=1e-4), "mismatch vs pure-JAX reference"
    print("KERNEL_OK")
</pallas_src>

<mosaic_0001>
module attributes {stable_mosaic.version = 11 : i64} {
  func.func @_gat_kernel(%arg0: i32, %arg1: memref<16x256xf32, #tpu.memory_space<vmem>>, %arg2: memref<256x256xf32, #tpu.memory_space<vmem>>, %arg3: memref<32x16xf32, #tpu.memory_space<vmem>>, %arg4: memref<32x256xf32, #tpu.memory_space<vmem>>) attributes {dimension_semantics = [#tpu.dimension_semantics<parallel>], iteration_bounds = array<i64: 1>, scalar_prefetch = 0 : i64, scratch_operands = 0 : i64, tpu.core_type = #tpu.core_type<tc>, window_params = [{transform_indices = @transform_0, window_bounds = array<i64: 16, 256>}, {transform_indices = @transform_1, window_bounds = array<i64: 256, 256>}, {pipeline_mode = #tpu.pipeline_mode<synchronous>, transform_indices = @transform_2, window_bounds = array<i64: 32, 16>}, {transform_indices = @transform_3, window_bounds = array<i64: 32, 256>}]} {
    %c0 = arith.constant 0 : index
    %c0_0 = arith.constant 0 : index
    %0 = vector.load %arg3[%c0, %c0_0] : memref<32x16xf32, #tpu.memory_space<vmem>>, vector<32x16xf32>
    %c0_1 = arith.constant 0 : index
    %c0_2 = arith.constant 0 : index
    %1 = vector.load %arg1[%c0_1, %c0_2] : memref<16x256xf32, #tpu.memory_space<vmem>>, vector<16x256xf32>
    %cst = arith.constant dense<0.000000e+00> : vector<32x256xf32>
    %2 = tpu.matmul %0, %1, %cst {dimension_numbers = #tpu.dot_dimension_numbers<[1], [0], [0], [1], [0, 0, 1, 1], [], []>} : vector<32x16xf32>, vector<16x256xf32>, vector<32x256xf32> -> vector<32x256xf32>
    %c0_3 = arith.constant 0 : index
    %c0_4 = arith.constant 0 : index
    %3 = vector.load %arg2[%c0_3, %c0_4] : memref<256x256xf32, #tpu.memory_space<vmem>>, vector<256x256xf32>
    %cst_5 = arith.constant dense<0.000000e+00> : vector<32x256xf32>
    %4 = tpu.matmul %2, %3, %cst_5 {dimension_numbers = #tpu.dot_dimension_numbers<[1], [0], [0], [1], [0, 0, 1, 1], [], []>} : vector<32x256xf32>, vector<256x256xf32>, vector<32x256xf32> -> vector<32x256xf32>
    %c0_6 = arith.constant 0 : index
    %c0_7 = arith.constant 0 : index
    %5 = vector.load %arg4[%c0_6, %c0_7] : memref<32x256xf32, #tpu.memory_space<vmem>>, vector<32x256xf32>
    tpu.vector_store %arg4[%c0_6, %c0_7], %4 {strides = array<i32>} : memref<32x256xf32, #tpu.memory_space<vmem>>, vector<32x256xf32>,
    return
  }
  func.func @transform_0(%arg0: i32) -> (i32, i32) {
    %c0_i32 = arith.constant 0 : i32
    %c0_i32_0 = arith.constant 0 : i32
    return %c0_i32, %arg0 : i32, i32
  }
  func.func @transform_1(%arg0: i32) -> (i32, i32) {
    %c0_i32 = arith.constant 0 : i32
    %c0_i32_0 = arith.constant 0 : i32
    return %arg0, %c0_i32 : i32, i32
  }
  func.func @transform_2(%arg0: i32) -> (i32, i32) {
    %c0_i32 = arith.constant 0 : i32
    %c0_i32_0 = arith.constant 0 : i32
    %c0_i32_1 = arith.constant 0 : i32
    return %c0_i32, %c0_i32_0 : i32, i32
  }
  func.func @transform_3(%arg0: i32) -> (i32, i32) {
    %c0_i32 = arith.constant 0 : i32
    %c0_i32_0 = arith.constant 0 : i32
    return %c0_i32, %arg0 : i32, i32
  }
}

</mosaic_0001>

<bundles_post_ra>
// kernel: tpu_custom_call.1
= control target key start
LH: loop header
LB: loop body
LE: loop exit
PB: predicated region body
PF: predicated region fallthrough
CT: control target
= control target key end

     0   :  { %8 = vsyncpa [#allocation3], 0  ;;  %s557_s0 = inlined_call_operand.vmem [shape: f32[16,256], index: 0, kind: input, shape index: {}]   ;;  %s558_s1 = inlined_call_operand.hbm [shape: f32[256,256], index: 1, kind: input, shape index: {}]   ;;  %s559_s2 = inlined_call_operand.vmem [shape: f32[32,16], index: 2, kind: input, shape index: {}]   ;;  %s560_s3 = inlined_call_operand.hbm [shape: f32[32,256], index: 3, kind: output, shape index: {}]  }
   0x1   :  { %9 = vsyncpa [#allocation4], 0  ;;  %s474_s12 = smov [#allocation2]   ;;  %s426_s16 = scalar_lea.hbm %s558_s1, 8192 }
   0x2   :  { %s17_s13 = sshll.u32 %s474_s12, 4  ;;  %p427_p0 = scmp.ne.s32.totalorder %s558_s1, %s426_s16  ;;  %s18_s13 = int_to_ptr.vmem [resolvable:$true] %s17_s13 }
   0x3   :  { %p430_p1 = scmp.lt.u32.totalorder %s426_s16, %s558_s1 }
   0x5   :  { %p432_p2 = pnand %p430_p1, %p427_p0 }
   0x7   :  { %435 = shalt.err (!%p432_p2)
}
   0x8   :  { %s436_s21 = scalar_lea.vmem %s18_s13, 8192  ;;  %p441_p4 = scmp.lt.s32.totalorder %s18_s13, %s18_s13 }
   0x9   :  { %p437_p3 = scmp.ne.s32.totalorder %s18_s13, %s436_s21  ;;  %p442_p5 = scmp.lt.s32.totalorder %s436_s21, %s436_s21 }
   0xb   :  { %p443_p6 = por %p442_p5, %p441_p4 }
   0xd   :  { %p444_p7 = pnand %p443_p6, %p437_p3 }
   0xf   :  { %447 = shalt.err (!%p444_p7)
}
  0x10   :  { %s475_s22 = smov 256   ;;  %s476_s23 = smov 16  }
  0x11   :  { %23 = dma.hbm_to_vmem [thread:$0]  %s558_s1, 8192, %s18_s13, [#allocation3], %s475_s22, %s475_s22, %s476_s23  }
  0x12   :  { %470 = dma.done.wait [#allocation3], 8192  }
  0x13   :  { %471 = vsyncadd [#allocation3], 4294959104  ;;  %v477_v0 = vmov 0.0   ;;  %v34_v1 = vld [vmem:[%s557_s0 + $0x8] sm:$0xff]  ;;  %v36_v2 = vld [vmem:[%s557_s0 + $0x18] sm:$0xff]  ;;  %vm37_vm0 = vcmask 130048  }
  0x14   :  { %114 = vmatprep.mubr.f32.mxu0 %v477_v0  ;;  %v33_v3 = vld [vmem:[%s557_s0] sm:$0xff]  ;;  %v321_v4 = vpack.c.bf16 %v36_v2, %v34_v1  ;;  %v35_v5 = vld [vmem:[%s557_s0 + $0x10] sm:$0xff]  ;;  %v140_v7 = vld [vmem:[#allocation2 + $0x8] sm:$0xff] }
  0x15   :  { %v323_v6 = vpack.c.bf16 %v35_v5, %v33_v3  ;;  %v142_v8 = vld [vmem:[#allocation2 + $0x18] sm:$0xff]  ;;  %v139_v9 = vld [vmem:[#allocation2] sm:$0xff]  ;;  %v141_v10 = vld [vmem:[#allocation2 + $0x10] sm:$0xff] }
  0x16   :  { %322 = vmatprep.subr.bf16.mxu0 %v321_v4  ;;  %v29_v11 = vld [vmem:[%s559_s2] sm:$0xff]  ;;  %v325_v12 = vpack.c.bf16 %v142_v8, %v140_v7  ;;  %v327_v13 = vpack.c.bf16 %v141_v10, %v139_v9  ;;  %v144_v14 = vld [vmem:[#allocation2 + $0x28] sm:$0xff]  ;;  %v146_v15 = vld [vmem:[#allocation2 + $0x38] sm:$0xff] }
  0x17   :  { %324 = vmatpush1.bf16.msra.mxu0 %v323_v6  ;;  %v329_v16 = vpack.c.bf16 %v146_v15, %v144_v14  ;;  %v143_v17 = vld [vmem:[#allocation2 + $0x20] sm:$0xff]  ;;  %v145_v18 = vld [vmem:[#allocation2 + $0x30] sm:$0xff]  ;;  %v148_v19 = vld [vmem:[#allocation2 + $0x48] sm:$0xff] }
  0x18   :  { %326 = vmatprep.subr.bf16.mxu0 %v325_v12  ;;  %389 = vmatprep.subr.bf16.mxu1 %v325_v12  ;;  %v150_v20 = vld [vmem:[#allocation2 + $0x58] sm:$0xff]  ;;  %v30_v21 = vld [vmem:[%s559_s2 + $0x8] sm:$0xff]  ;;  %v331_v22 = vpack.c.bf16 %v145_v18, %v143_v17  ;;  %v147_v24 = vld [vmem:[#allocation2 + $0x40] sm:$0xff] }
  0x19   :  { %405 = vmatpush1.bf16.msra.mxu1 %v327_v13  ;;  %v333_v23 = vpack.c.bf16 %v150_v20, %v148_v19  ;;  %v149_v25 = vld [vmem:[#allocation2 + $0x50] sm:$0xff]  ;;  %v152_v26 = vld [vmem:[#allocation2 + $0x68] sm:$0xff]  ;;  %v154_v27 = vld [vmem:[#allocation2 + $0x78] sm:$0xff] }
  0x1a   :  { %317 = vmatmul.mubr.msk.f32.vlgmr.msra.gmra.mrb[0].mxu0 %vm37_vm0, %v29_v11  ;;  %390 = vmatprep.subr.bf16.mxu1 %v329_v16  ;;  %v31_v28 = vld [vmem:[%s559_s2 + $0x10] sm:$0xff]  ;;  %v335_v29 = vpack.c.bf16 %v149_v25, %v147_v24  ;;  %v337_v30 = vpack.c.bf16 %v154_v27, %v152_v26  ;;  %v151_v31 = vld [vmem:[#allocation2 + $0x60] sm:$0xff]  ;;  %v156_v33 = vld [vmem:[#allocation2 + $0x88] sm:$0xff] }
  0x1b   :  { %120 = vmatprep.mubr.f32.mxu0 %v477_v0  ;;  %328 = vmatpush1.bf16.msra.mxu0 %v327_v13  ;;  %v153_v32 = vld [vmem:[#allocation2 + $0x70] sm:$0xff]  ;;  %v158_v34 = vld [vmem:[#allocation2 + $0x98] sm:$0xff]  ;;  %v155_v38 = vld [vmem:[#allocation2 + $0x80] sm:$0xff] }
  0x1c   :  { %330 = vmatprep.subr.bf16.mxu0 %v329_v16  ;;  %v32_v35 = vld [vmem:[%s559_s2 + $0x18] sm:$0xff]  ;;  %v339_v36 = vpack.c.bf16 %v153_v32, %v151_v31  ;;  %v341_v37 = vpack.c.bf16 %v158_v34, %v156_v33  ;;  %v157_v39 = vld [vmem:[#allocation2 + $0x90] sm:$0xff]  ;;  %v160_v40 = vld [vmem:[#allocation2 + $0xa8] sm:$0xff]  ;;  %s478_s2 = smov [#allocation5]  }
  0x1d   :  { %406 = vmatpush1.bf16.msra.mxu1 %v331_v22  ;;  %v162_v41 = vld [vmem:[#allocation2 + $0xb8] sm:$0xff]  ;;  %v343_v42 = vpack.c.bf16 %v157_v39, %v155_v38  ;;  %v159_v44 = vld [vmem:[#allocation2 + $0xa0] sm:$0xff]  ;;  %v161_v45 = vld [vmem:[#allocation2 + $0xb0] sm:$0xff]  ;;  %s305_s13 = sshll.u32 %s478_s2, 4  ;;  %s306_s13 = int_to_ptr.vmem [resolvable:$true] %s305_s13 }
  0x1e   :  { %318 = vmatmul.mubr.msk.f32.gmra.mrb[2].mxu0 %vm37_vm0, %v30_v21  ;;  %391 = vmatprep.subr.bf16.mxu1 %v333_v23  ;;  %v345_v43 = vpack.c.bf16 %v162_v41, %v160_v40  ;;  %v164_v46 = vld [vmem:[#allocation2 + $0xc8] sm:$0xff]  ;;  %v166_v47 = vld [vmem:[#allocation2 + $0xd8] sm:$0xff]  ;;  %v347_v48 = vpack.c.bf16 %v161_v45, %v159_v44  ;;  %v163_v50 = vld [vmem:[#allocation2 + $0xc0] sm:$0xff]  ;;  %s448_s14 = scalar_lea.vmem %s306_s13, 1024  ;;  %p453_p9 = scmp.lt.s32.totalorder %s306_s13, %s306_s13 }
  0x1f   :  { %126 = vmatprep.mubr.f32.mxu0 %v477_v0  ;;  %332 = vmatpush1.bf16.msra.mxu0 %v331_v22  ;;  %v349_v49 = vpack.c.bf16 %v166_v47, %v164_v46  ;;  %v165_v51 = vld [vmem:[#allocation2 + $0xd0] sm:$0xff]  ;;  %v168_v52 = vld [vmem:[#allocation2 + $0xe8] sm:$0xff]  ;;  %v170_v53 = vld [vmem:[#allocation2 + $0xf8] sm:$0xff]  ;;  %p449_p8 = scmp.ne.s32.totalorder %s306_s13, %s448_s14  ;;  %p454_p10 = scmp.lt.s32.totalorder %s448_s14, %s448_s14 }
  0x20   :  { %334 = vmatprep.subr.bf16.mxu0 %v333_v23  ;;  %v351_v54 = vpack.c.bf16 %v165_v51, %v163_v50  ;;  %v353_v55 = vpack.c.bf16 %v170_v53, %v168_v52  ;;  %v167_v56 = vld [vmem:[#allocation2 + $0xe0] sm:$0xff]  ;;  %v169_v57 = vld [vmem:[#allocation2 + $0xf0] sm:$0xff]  ;;  %v172_v58 = vld [vmem:[#allocation2 + $0x108] sm:$0xff] }
  0x21   :  { %407 = vmatpush1.bf16.msra.mxu1 %v335_v29  ;;  %v174_v59 = vld [vmem:[#allocation2 + $0x118] sm:$0xff]  ;;  %v355_v60 = vpack.c.bf16 %v169_v57, %v167_v56  ;;  %v171_v62 = vld [vmem:[#allocation2 + $0x100] sm:$0xff]  ;;  %v173_v63 = vld [vmem:[#allocation2 + $0x110] sm:$0xff]  ;;  %p455_p11 = por %p454_p10, %p453_p9 }
  0x22   :  { %319 = vmatmul.mubr.msk.f32.gmra.mrb[4].mxu0 %vm37_vm0, %v31_v28  ;;  %392 = vmatprep.subr.bf16.mxu1 %v337_v30  ;;  %v357_v61 = vpack.c.bf16 %v174_v59, %v172_v58  ;;  %v178_v1 = vld [vmem:[#allocation2 + $0x138] sm:$0xff]  ;;  %v359_v2 = vpack.c.bf16 %v173_v63, %v171_v62  ;;  %v175_v4 = vld [vmem:[#allocation2 + $0x120] sm:$0xff]  ;;  %v177_v5 = vld [vmem:[#allocation2 + $0x130] sm:$0xff] }
  0x23   :  { %132 = vmatprep.mubr.f32.mxu0 %v477_v0  ;;  %336 = vmatpush1.bf16.msra.mxu0 %v335_v29  ;;  %v176_v0 = vld [vmem:[#allocation2 + $0x128] sm:$0xff]  ;;  %v182_v7 = vld [vmem:[#allocation2 + $0x158] sm:$0xff]  ;;  %v363_v8 = vpack.c.bf16 %v177_v5, %v175_v4  ;;  %v179_v10 = vld [vmem:[#allocation2 + $0x140] sm:$0xff]  ;;  %p456_p12 = pnand %p455_p11, %p449_p8 }
  0x24   :  { %338 = vmatprep.subr.bf16.mxu0 %v337_v30  ;;  %v361_v3 = vpack.c.bf16 %v178_v1, %v176_v0  ;;  %v180_v6 = vld [vmem:[#allocation2 + $0x148] sm:$0xff]  ;;  %v181_v11 = vld [vmem:[#allocation2 + $0x150] sm:$0xff]  ;;  %v186_v13 = vld [vmem:[#allocation2 + $0x178] sm:$0xff] }
  0x25   :  { %408 = vmatpush1.bf16.msra.mxu1 %v339_v36  ;;  %v365_v9 = vpack.c.bf16 %v182_v7, %v180_v6  ;;  %v184_v12 = vld [vmem:[#allocation2 + $0x168] sm:$0xff]  ;;  %v367_v14 = vpack.c.bf16 %v181_v11, %v179_v10  ;;  %v183_v16 = vld [vmem:[#allocation2 + $0x160] sm:$0xff]  ;;  %v185_v17 = vld [vmem:[#allocation2 + $0x170] sm:$0xff] }
  0x26   :  { %320 = vmatmul.mubr.msk.f32.gmra.mrb[6].mxu0 %vm37_vm0, %v32_v35  ;;  %393 = vmatprep.subr.bf16.mxu1 %v341_v37  ;;  %v369_v15 = vpack.c.bf16 %v186_v13, %v184_v12  ;;  %v188_v18 = vld [vmem:[#allocation2 + $0x188] sm:$0xff]  ;;  %v190_v19 = vld [vmem:[#allocation2 + $0x198] sm:$0xff]  ;;  %v371_v20 = vpack.c.bf16 %v185_v17, %v183_v16  ;;  %v187_v22 = vld [vmem:[#allocation2 + $0x180] sm:$0xff] }
  0x27   :  { %340 = vmatpush1.bf16.msra.mxu0 %v339_v36  ;;  %v373_v21 = vpack.c.bf16 %v190_v19, %v188_v18  ;;  %v189_v23 = vld [vmem:[#allocation2 + $0x190] sm:$0xff]  ;;  %v192_v24 = vld [vmem:[#allocation2 + $0x1a8] sm:$0xff]  ;;  %v194_v25 = vld [vmem:[#allocation2 + $0x1b8] sm:$0xff] }
  0x28   :  { %342 = vmatprep.subr.bf16.mxu0 %v341_v37  ;;  %v375_v26 = vpack.c.bf16 %v189_v23, %v187_v22  ;;  %v377_v27 = vpack.c.bf16 %v194_v25, %v192_v24  ;;  %v191_v28 = vld [vmem:[#allocation2 + $0x1a0] sm:$0xff]  ;;  %v193_v29 = vld [vmem:[#allocation2 + $0x1b0] sm:$0xff]  ;;  %v196_v30 = vld [vmem:[#allocation2 + $0x1c8] sm:$0xff] }
  0x29   :  { %409 = vmatpush1.bf16.msra.mxu1 %v343_v42  ;;  %v198_v31 = vld [vmem:[#allocation2 + $0x1d8] sm:$0xff]  ;;  %v379_v32 = vpack.c.bf16 %v193_v29, %v191_v28  ;;  %v195_v34 = vld [vmem:[#allocation2 + $0x1c0] sm:$0xff]  ;;  %v197_v35 = vld [vmem:[#allocation2 + $0x1d0] sm:$0xff] }
  0x2a   :  { %394 = vmatprep.subr.bf16.mxu1 %v345_v43  ;;  %v381_v33 = vpack.c.bf16 %v198_v31, %v196_v30  ;;  %v200_v36 = vld [vmem:[#allocation2 + $0x1e8] sm:$0xff]  ;;  %v202_v37 = vld [vmem:[#allocation2 + $0x1f8] sm:$0xff]  ;;  %v383_v38 = vpack.c.bf16 %v197_v35, %v195_v34  ;;  %v199_v40 = vld [vmem:[#allocation2 + $0x1e0] sm:$0xff] }
  0x2b   :  { %344 = vmatpush1.bf16.msra.mxu0 %v343_v42  ;;  %v385_v39 = vpack.c.bf16 %v202_v37, %v200_v36  ;;  %v201_v41 = vld [vmem:[#allocation2 + $0x1f0] sm:$0xff] }
  0x2c   :  { %346 = vmatprep.subr.bf16.mxu0 %v345_v43  ;;  %v387_v42 = vpack.c.bf16 %v201_v41, %v199_v40 }
  0x2d   :  { %410 = vmatpush1.bf16.msra.mxu1 %v347_v48 }
  0x2e   :  { %395 = vmatprep.subr.bf16.mxu1 %v349_v49 }
  0x2f   :  { %348 = vmatpush1.bf16.msra.mxu0 %v347_v48 }
  0x30   :  { %350 = vmatprep.subr.bf16.mxu0 %v349_v49 }
  0x31   :  { %411 = vmatpush1.bf16.msra.mxu1 %v351_v54 }
  0x32   :  { %396 = vmatprep.subr.bf16.mxu1 %v353_v55 }
  0x33   :  { %352 = vmatpush1.bf16.msra.mxu0 %v351_v54 }
  0x34   :  { %354 = vmatprep.subr.bf16.mxu0 %v353_v55 }
  0x35   :  { %412 = vmatpush1.bf16.msra.mxu1 %v355_v60 }
  0x36   :  { %397 = vmatprep.subr.bf16.mxu1 %v357_v61 }
  0x37   :  { %356 = vmatpush1.bf16.msra.mxu0 %v355_v60 }
  0x38   :  { %358 = vmatprep.subr.bf16.mxu0 %v357_v61 }
  0x39   :  { %413 = vmatpush1.bf16.msra.mxu1 %v359_v2 }
  0x3a   :  { %398 = vmatprep.subr.bf16.mxu1 %v361_v3 }
  0x3b   :  { %360 = vmatpush1.bf16.msra.mxu0 %v359_v2 }
  0x3c   :  { %362 = vmatprep.subr.bf16.mxu0 %v361_v3 }
  0x3d   :  { %414 = vmatpush1.bf16.msra.mxu1 %v363_v8 }
  0x3e   :  { %399 = vmatprep.subr.bf16.mxu1 %v365_v9 }
  0x3f   :  { %364 = vmatpush1.bf16.msra.mxu0 %v363_v8 }
  0x40   :  { %366 = vmatprep.subr.bf16.mxu0 %v365_v9 }
  0x41   :  { %415 = vmatpush1.bf16.msra.mxu1 %v367_v14 }
  0x42   :  { %400 = vmatprep.subr.bf16.mxu1 %v369_v15 }
  0x43   :  { %368 = vmatpush1.bf16.msra.mxu0 %v367_v14 }
  0x44   :  { %370 = vmatprep.subr.bf16.mxu0 %v369_v15 }
  0x45   :  { %416 = vmatpush1.bf16.msra.mxu1 %v371_v20 }
  0x46   :  { %401 = vmatprep.subr.bf16.mxu1 %v373_v21 }
  0x47   :  { %372 = vmatpush1.bf16.msra.mxu0 %v371_v20 }
  0x48   :  { %374 = vmatprep.subr.bf16.mxu0 %v373_v21 }
  0x49   :  { %417 = vmatpush1.bf16.msra.mxu1 %v375_v26 }
  0x4a   :  { %402 = vmatprep.subr.bf16.mxu1 %v377_v27 }
  0x4b   :  { %376 = vmatpush1.bf16.msra.mxu0 %v375_v26 }
  0x4c   :  { %378 = vmatprep.subr.bf16.mxu0 %v377_v27 }
  0x4d   :  { %418 = vmatpush1.bf16.msra.mxu1 %v379_v32 }
  0x4e   :  { %403 = vmatprep.subr.bf16.mxu1 %v381_v33 }
  0x4f   :  { %380 = vmatpush1.bf16.msra.mxu0 %v379_v32 }
  0x50   :  { %382 = vmatprep.subr.bf16.mxu0 %v381_v33 }
  0x51   :  { %419 = vmatpush1.bf16.msra.mxu1 %v383_v38 }
  0x52   :  { %404 = vmatprep.subr.bf16.mxu1 %v385_v39 }
  0x53   :  { %384 = vmatpush1.bf16.msra.mxu0 %v383_v38 }
  0x54   :  { %386 = vmatprep.subr.bf16.mxu0 %v385_v39 }
  0x55   :  { %420 = vmatpush1.bf16.msra.mxu1 %v387_v42 }
  0x57   :  { %388 = vmatpush1.bf16.msra.mxu0 %v387_v42 }
  0xed   :  { %v116_v43 = vpop.f32.mrb[0].mxu0 }
  0xee   :  { %v118_v44 = vpop.f32.mrb[1].mxu0 }
  0xef   :  { %267 = vmatprep.mubr.f32.mxu0 %v118_v44 }
  0xf0   :  { %268 = vmatmul.mubr.f32.vlgmr.msra.gmra.mrb[8].mxu0 %v116_v43 }
  0xf1   :  { %v122_v45 = vpop.f32.mrb[2].mxu0 }
  0xf2   :  { %v124_v46 = vpop.f32.mrb[3].mxu0 }
  0xf3   :  { %273 = vmatprep.mubr.f32.mxu1 %v124_v46 }
  0xf4   :  { %274 = vmatmul.mubr.f32.vlgmr.msra.gmra.mrb[0].mxu1 %v122_v45 }
  0xf5   :  { %v128_v47 = vpop.f32.mrb[4].mxu0 }
  0xf6   :  { %v130_v48 = vpop.f32.mrb[5].mxu0 }
  0xf7   :  { %279 = vmatprep.mubr.f32.mxu1 %v130_v48 }
  0xf8   :  { %280 = vmatmul.mubr.f32.gmra.mrb[2].mxu1 %v128_v47 }
  0xf9   :  { %v134_v49 = vpop.f32.mrb[6].mxu0 }
  0xfa   :  { %v136_v50 = vpop.f32.mrb[7].mxu0 }
  0xfb   :  { %285 = vmatprep.mubr.f32.mxu1 %v136_v50 }
  0xfc   :  { %286 = vmatmul.mubr.f32.gmra.mrb[4].mxu1 %v134_v49 }
 0x1c3   :  { %v269_v51 = vpop.f32.mrb[8].mxu0 }
 0x1c4   :  { %292 = vst [vmem:[#allocation5] sm:$0xff] %v269_v51  ;;  %v271_v52 = vpop.f32.mrb[9].mxu0 }
 0x1c5   :  { %293 = vst [vmem:[#allocation5 + $0x8] sm:$0xff] %v271_v52 }
 0x1c7   :  { %v275_v53 = vpop.f32.mrb[0].mxu1 }
 0x1c8   :  { %294 = vst [vmem:[#allocation5 + $0x10] sm:$0xff] %v275_v53  ;;  %v277_v54 = vpop.f32.mrb[1].mxu1 }
 0x1c9   :  { %295 = vst [vmem:[#allocation5 + $0x18] sm:$0xff] %v277_v54 }
 0x1cb   :  { %v281_v55 = vpop.f32.mrb[2].mxu1 }
 0x1cc   :  { %296 = vst [vmem:[#allocation5 + $0x20] sm:$0xff] %v281_v55  ;;  %v283_v56 = vpop.f32.mrb[3].mxu1 }
 0x1cd   :  { %297 = vst [vmem:[#allocation5 + $0x28] sm:$0xff] %v283_v56 }
 0x1cf   :  { %v287_v57 = vpop.f32.mrb[4].mxu1 }
 0x1d0   :  { %298 = vst [vmem:[#allocation5 + $0x30] sm:$0xff] %v287_v57  ;;  %v289_v58 = vpop.f32.mrb[5].mxu1 }
 0x1d1   :  { %299 = vst [vmem:[#allocation5 + $0x38] sm:$0xff] %v289_v58 }
 0x1d2   :  { %459 = shalt.err (!%p456_p12)
}
 0x1d3   :  { %s460_s17 = scalar_lea.hbm %s560_s3, 1024 }
 0x1d4   :  { %p461_p13 = scmp.ne.s32.totalorder %s560_s3, %s460_s17  ;;  %p464_p0 = scmp.lt.u32.totalorder %s460_s17, %s560_s3 }
 0x1d6   :  { %p466_p1 = pnand %p464_p0, %p461_p13 }
 0x1d8   :  { %469 = shalt.err (!%p466_p1)
}
 0x1d9   :  { %311 = dma.vmem_to_hbm [thread:$0]  %s306_s13, 1024, %s560_s3, [#allocation4], %s475_s22, %s475_s22, %s476_s23  }
 0x1da   :  { %472 = dma.done.wait [#allocation4], 1024  }
 0x1db   :  { %473 = vsyncadd [#allocation4], 4294966272 }
 0x1dc   :  { %315 = vsyncpa [#allocation3], 1 }
 0x1dd   :  { %316 = vsyncpa [#allocation4], 1 }

</bundles_post_ra>
